<compile_context>
chip_gen: v7x
topology: tpu7x:2x2x1
jax: 0.10.0
libtpu: 0.0.40
codegen_flags: <defaults>
</compile_context>

<pallas_src>
import jax
import jax.numpy as jnp
from jax.experimental import pallas as pl
from jax.experimental.pallas import tpu as pltpu


def _gelu(x):
    # Exact (erf-based) GELU matching torch.nn.GELU() default; erf via the
    # Abramowitz & Stegun 7.1.26 rational approximation (|err| < 1.5e-7),
    # well inside the 5e-4 test tolerance.  Only VPU/EUP-friendly ops.
    # (pl.reciprocal(approx=True) for the 1/(1+p*az) term was considered but
    #  declined: its ~1e-4 relative error can push |gelu err| past 5e-4.)
    p = 0.3275911
    a1, a2, a3, a4, a5 = (0.254829592, -0.284496736, 1.421413741,
                          -1.453152027, 1.061405429)
    z = x * 0.7071067811865476
    az = jnp.abs(z)
    t = 1.0 / (1.0 + p * az)
    poly = ((((a5 * t + a4) * t + a3) * t + a2) * t + a1) * t
    erf_abs = 1.0 - poly * jnp.exp(-az * az)
    erf_z = jnp.where(z >= 0.0, erf_abs, -erf_abs)
    return 0.5 * x * (1.0 + erf_z)


def _round_up(x, m):
    return (x + m - 1) // m * m


def _cdiv(a, b):
    return -(-a // b)


def _kernel(x_ref, w1_ref, w2_ref, b2_ref, o_ref):
    # Grouped 7x7 conv as one MXU matmul; b1 is folded into w1 via the
    # constant-1 slab column, so no separate bias add is needed here.
    y = jnp.dot(x_ref[...], w1_ref[...], preferred_element_type=jnp.float32)
    y = _gelu(y)
    # 1x1 conv + bias + GELU.  (On v5e this 8x8-real matmul could instead be
    # done as 8 VPU broadcast-MACs to skip the MRF drain; kept as a single
    # MXU dot here for generality across embed_dim.)
    y = jnp.dot(y, w2_ref[...], preferred_element_type=jnp.float32)
    o_ref[...] = _gelu(y + b2_ref[...])


def patch_embed_forward(x_nchw, w_lkb, b_lkb, w_pw, b_pw, *, patch_size, stride):
    """PatchEmbed forward (reparameterized inference form). Returns NCHW like PyTorch."""
    B, C_in, H, W = x_nchw.shape
    E = w_lkb.shape[0]
    K = patch_size
    s = stride
    pad = K // 2
    H_out = (H + 2 * pad - K) // s + 1
    W_out = (W + 2 * pad - K) // s + 1

    # ---------------- layout plumbing (wrapper): NCHW->NHWC, pad, im2col ----
    x = jnp.transpose(x_nchw, (0, 2, 3, 1)).astype(jnp.float32)
    x_pad = jnp.pad(x, ((0, 0), (pad, pad), (pad, pad), (0, 0)))
    taps = []
    for kh in range(K):
        for kw in range(K):
            taps.append(x_pad[:, kh:kh + s * H_out:s, kw:kw + s * W_out:s, :])
    # (B, Ho, Wo, K*K, C_in) -> (M, K*K*C_in); tap-major, channel-minor.
    patches = jnp.stack(taps, axis=3).reshape(B * H_out * W_out, K * K * C_in)

    # ---------------- parameter prep: block-sparse dense weights + bias fold ----
    Kc = K * K * C_in                   # 196 real contraction columns
    Kc_slab = _round_up(Kc + 1, 8)      # + ones column for bias fold -> 200
    E_pad = _round_up(E, 128)           # lane-dense output stores (8 -> 128)

    r = E // C_in                       # output channels per group
    o_idx = jnp.arange(E)
    g_idx = o_idx // r
    w_tap = jnp.transpose(w_lkb[:, 0, :, :], (1, 2, 0)).astype(jnp.float32)   # (K, K, E)
    w1 = jnp.zeros((K, K, C_in, E), jnp.float32).at[:, :, g_idx, o_idx].set(w_tap)
    w1 = w1.reshape(Kc, E)                                                    # (K*K*C_in, E)
    w1_p = (jnp.zeros((Kc_slab, E_pad), jnp.float32)
            .at[:Kc, :E].set(w1)
            .at[Kc, :E].set(b_lkb.astype(jnp.float32)))     # bias row (fold via ones col)
    w2 = jnp.transpose(w_pw[:, :, 0, 0], (1, 0)).astype(jnp.float32)          # (E_in, E_out)
    w2_p = jnp.zeros((E_pad, E_pad), jnp.float32).at[:E, :E].set(w2)
    b2_p = jnp.zeros((1, E_pad), jnp.float32).at[:, :E].set(b_pw.astype(jnp.float32))

    # ---------------- row tiling: big tiles, minimal padding, >=2 grid steps ----
    M = B * H_out * W_out
    TM_CAP = 1024
    if M <= 16:
        n_tiles = 1
    else:
        n_tiles = max(2, _cdiv(M, TM_CAP))      # >=2 so both v7x TCs get work
    TM = max(8, _round_up(_cdiv(M, n_tiles), 8))
    M_pad = _round_up(M, TM)
    grid = (M_pad // TM,)

    x_slab = (jnp.zeros((M_pad, Kc_slab), jnp.float32)
              .at[:M, :Kc].set(patches)
              .at[:, Kc].set(1.0))              # constant-1 column for the b1 fold

    # ---------------- explicit VMEM budget (v7x: 64 MiB phys / 32 MiB scoped) ----
    vmem_need = 4 * (2 * TM * Kc_slab        # double-buffered x tiles
                     + 2 * TM * E_pad        # double-buffered out tiles
                     + Kc_slab * E_pad + E_pad * E_pad + E_pad)   # resident weights/bias
    vmem_limit = int(min(48 * 1024 * 1024, max(8 * 1024 * 1024, 2 * vmem_need)))

    # ---------------- Pallas kernel: two MXU matmuls + GELUs ----
    out = pl.pallas_call(
        _kernel,
        out_shape=jax.ShapeDtypeStruct((M_pad, E_pad), jnp.float32),
        grid=grid,
        in_specs=[
            pl.BlockSpec((TM, Kc_slab), lambda i: (i, 0)),
            pl.BlockSpec((Kc_slab, E_pad), lambda i: (0, 0)),
            pl.BlockSpec((E_pad, E_pad), lambda i: (0, 0)),
            pl.BlockSpec((1, E_pad), lambda i: (0, 0)),
        ],
        out_specs=pl.BlockSpec((TM, E_pad), lambda i: (i, 0)),
        compiler_params=pltpu.CompilerParams(
            dimension_semantics=("parallel",),
            vmem_limit_bytes=vmem_limit),
    )(x_slab, w1_p, w2_p, b2_p)

    # ---------------- layout plumbing: drop padding, back to NCHW ----
    y = out[:M, :E].reshape(B, H_out, W_out, E)
    return jnp.transpose(y, (0, 3, 1, 2))


def reference_nchw(x_nchw, w_lkb, b_lkb, w_pw, b_pw, *, patch_size, stride):
    """Pure-JAX reference (lax.conv) with exact erf GELU, NCHW output."""
    C_in = x_nchw.shape[1]
    pad = patch_size // 2
    x = jnp.transpose(x_nchw, (0, 2, 3, 1)).astype(jnp.float32)
    w = jnp.transpose(w_lkb, (2, 3, 1, 0)).astype(jnp.float32)  # (K, K, 1, E)
    y = jax.lax.conv_general_dilated(
        x, w, window_strides=(stride, stride),
        padding=((pad, pad), (pad, pad)),
        dimension_numbers=("NHWC", "HWIO", "NHWC"),
        feature_group_count=C_in)
    y = jax.nn.gelu(y + b_lkb, approximate=False)
    y = jnp.einsum("bhwc,oc->bhwo", y, w_pw[:, :, 0, 0]) + b_pw
    y = jax.nn.gelu(y, approximate=False)
    return jnp.transpose(y, (0, 3, 1, 2))


if __name__ == "__main__":
    B, C_in, H, W = 2, 4, 16, 16
    E, K, S = 8, 7, 2   # embed_dim, patch_size, stride

    key = jax.random.PRNGKey(0)
    k1, k2, k3, k4, k5 = jax.random.split(key, 5)
    x = jax.random.normal(k1, (B, C_in, H, W), jnp.float32)
    w_lkb = 0.2 * jax.random.normal(k2, (E, 1, K, K), jnp.float32)   # grouped conv weight
    b_lkb = 0.1 * jax.random.normal(k3, (E,), jnp.float32)
    w_pw = 0.2 * jax.random.normal(k4, (E, E, 1, 1), jnp.float32)    # 1x1 conv weight
    b_pw = 0.1 * jax.random.normal(k5, (E,), jnp.float32)

    out = patch_embed_forward(x, w_lkb, b_lkb, w_pw, b_pw, patch_size=K, stride=S)
    out = jax.block_until_ready(out)

    ref = reference_nchw(x, w_lkb, b_lkb, w_pw, b_pw, patch_size=K, stride=S)
    if not bool(jnp.allclose(out, ref, atol=5e-4, rtol=5e-4)):
        raise AssertionError("Pallas PatchEmbed output does not match reference")
    print("KERNEL_OK")
</pallas_src>

<mosaic_0001>
module attributes {stable_mosaic.version = 11 : i64} {
  func.func @_kernel(%arg0: i32, %arg1: memref<64x200xf32, #tpu.memory_space<vmem>>, %arg2: memref<200x128xf32, #tpu.memory_space<vmem>>, %arg3: memref<128x128xf32, #tpu.memory_space<vmem>>, %arg4: memref<1x128xf32, #tpu.memory_space<vmem>>, %arg5: memref<64x128xf32, #tpu.memory_space<vmem>>) attributes {dimension_semantics = [#tpu.dimension_semantics<parallel>], iteration_bounds = array<i64: 2>, scalar_prefetch = 0 : i64, scratch_operands = 0 : i64, tpu.core_type = #tpu.core_type<tc>, window_params = [{transform_indices = @transform_0, window_bounds = array<i64: 64, 200>}, {pipeline_mode = #tpu.pipeline_mode<synchronous>, transform_indices = @transform_1, window_bounds = array<i64: 200, 128>}, {pipeline_mode = #tpu.pipeline_mode<synchronous>, transform_indices = @transform_2, window_bounds = array<i64: 128, 128>}, {pipeline_mode = #tpu.pipeline_mode<synchronous>, transform_indices = @transform_3, window_bounds = array<i64: 1, 128>}, {transform_indices = @transform_4, window_bounds = array<i64: 64, 128>}]} {
    %c0 = arith.constant 0 : index
    %c0_0 = arith.constant 0 : index
    %0 = vector.load %arg1[%c0, %c0_0] : memref<64x200xf32, #tpu.memory_space<vmem>>, vector<64x200xf32>
    %c0_1 = arith.constant 0 : index
    %c0_2 = arith.constant 0 : index
    %1 = vector.load %arg2[%c0_1, %c0_2] : memref<200x128xf32, #tpu.memory_space<vmem>>, vector<200x128xf32>
    %cst = arith.constant dense<0.000000e+00> : vector<64x128xf32>
    %2 = tpu.matmul %0, %1, %cst {dimension_numbers = #tpu.dot_dimension_numbers<[1], [0], [0], [1], [0, 0, 1, 1], [], []>} : vector<64x200xf32>, vector<200x128xf32>, vector<64x128xf32> -> vector<64x128xf32>
    %cst_3 = arith.constant 0.707106769 : f32
    %3 = vector.broadcast %cst_3 : f32 to vector<64x128xf32>
    %4 = arith.mulf %2, %3 : vector<64x128xf32>
    %5 = math.absf %4 : vector<64x128xf32>
    %cst_4 = arith.constant 0.327591091 : f32
    %6 = vector.broadcast %cst_4 : f32 to vector<64x128xf32>
    %7 = arith.mulf %6, %5 : vector<64x128xf32>
    %cst_5 = arith.constant 1.000000e+00 : f32
    %8 = vector.broadcast %cst_5 : f32 to vector<64x128xf32>
    %9 = arith.addf %8, %7 : vector<64x128xf32>
    %cst_6 = arith.constant 1.000000e+00 : f32
    %10 = vector.broadcast %cst_6 : f32 to vector<64x128xf32>
    %11 = arith.divf %10, %9 : vector<64x128xf32>
    %cst_7 = arith.constant 1.06140542 : f32
    %12 = vector.broadcast %cst_7 : f32 to vector<64x128xf32>
    %13 = arith.mulf %12, %11 : vector<64x128xf32>
    %cst_8 = arith.constant -1.45315206 : f32
    %14 = vector.broadcast %cst_8 : f32 to vector<64x128xf32>
    %15 = arith.addf %13, %14 : vector<64x128xf32>
    %16 = arith.mulf %15, %11 : vector<64x128xf32>
    %cst_9 = arith.constant 1.42141378 : f32
    %17 = vector.broadcast %cst_9 : f32 to vector<64x128xf32>
    %18 = arith.addf %16, %17 : vector<64x128xf32>
    %19 = arith.mulf %18, %11 : vector<64x128xf32>
    %cst_10 = arith.constant -0.284496725 : f32
    %20 = vector.broadcast %cst_10 : f32 to vector<64x128xf32>
    %21 = arith.addf %19, %20 : vector<64x128xf32>
    %22 = arith.mulf %21, %11 : vector<64x128xf32>
    %cst_11 = arith.constant 0.254829586 : f32
    %23 = vector.broadcast %cst_11 : f32 to vector<64x128xf32>
    %24 = arith.addf %22, %23 : vector<64x128xf32>
    %25 = arith.mulf %24, %11 : vector<64x128xf32>
    %cst_12 = arith.constant 0.000000e+00 : f32
    %26 = vector.broadcast %cst_12 : f32 to vector<64x128xf32>
    %27 = arith.subf %26, %5 : vector<64x128xf32>
    %28 = arith.mulf %27, %5 : vector<64x128xf32>
    %29 = math.exp %28 : vector<64x128xf32>
    %30 = arith.mulf %25, %29 : vector<64x128xf32>
    %cst_13 = arith.constant 1.000000e+00 : f32
    %31 = vector.broadcast %cst_13 : f32 to vector<64x128xf32>
    %32 = arith.subf %31, %30 : vector<64x128xf32>
    %cst_14 = arith.constant 0.000000e+00 : f32
    %33 = vector.broadcast %cst_14 : f32 to vector<64x128xf32>
    %34 = arith.cmpf oge, %4, %33 : vector<64x128xf32>
    %cst_15 = arith.constant 0.000000e+00 : f32
    %35 = vector.broadcast %cst_15 : f32 to vector<64x128xf32>
    %36 = arith.subf %35, %32 : vector<64x128xf32>
    %37 = arith.select %34, %32, %36 : vector<64x128xi1>, vector<64x128xf32>
    %cst_16 = arith.constant 5.000000e-01 : f32
    %38 = vector.broadcast %cst_16 : f32 to vector<64x128xf32>
    %39 = arith.mulf %38, %2 : vector<64x128xf32>
    %cst_17 = arith.constant 1.000000e+00 : f32
    %40 = vector.broadcast %cst_17 : f32 to vector<64x128xf32>
    %41 = arith.addf %40, %37 : vector<64x128xf32>
    %42 = arith.mulf %39, %41 : vector<64x128xf32>
    %c0_18 = arith.constant 0 : index
    %c0_19 = arith.constant 0 : index
    %43 = vector.load %arg3[%c0_18, %c0_19] : memref<128x128xf32, #tpu.memory_space<vmem>>, vector<128x128xf32>
    %cst_20 = arith.constant dense<0.000000e+00> : vector<64x128xf32>
    %44 = tpu.matmul %42, %43, %cst_20 {dimension_numbers = #tpu.dot_dimension_numbers<[1], [0], [0], [1], [0, 0, 1, 1], [], []>} : vector<64x128xf32>, vector<128x128xf32>, vector<64x128xf32> -> vector<64x128xf32>
    %c0_21 = arith.constant 0 : index
    %c0_22 = arith.constant 0 : index
    %45 = vector.load %arg4[%c0_21, %c0_22] : memref<1x128xf32, #tpu.memory_space<vmem>>, vector<1x128xf32>
    %46 = vector.broadcast %45 : vector<1x128xf32> to vector<64x128xf32>
    %47 = arith.addf %44, %46 : vector<64x128xf32>
    %cst_23 = arith.constant 0.707106769 : f32
    %48 = vector.broadcast %cst_23 : f32 to vector<64x128xf32>
    %49 = arith.mulf %47, %48 : vector<64x128xf32>
    %50 = math.absf %49 : vector<64x128xf32>
    %cst_24 = arith.constant 0.327591091 : f32
    %51 = vector.broadcast %cst_24 : f32 to vector<64x128xf32>
    %52 = arith.mulf %51, %50 : vector<64x128xf32>
    %cst_25 = arith.constant 1.000000e+00 : f32
    %53 = vector.broadcast %cst_25 : f32 to vector<64x128xf32>
    %54 = arith.addf %53, %52 : vector<64x128xf32>
    %cst_26 = arith.constant 1.000000e+00 : f32
    %55 = vector.broadcast %cst_26 : f32 to vector<64x128xf32>
    %56 = arith.divf %55, %54 : vector<64x128xf32>
    %cst_27 = arith.constant 1.06140542 : f32
    %57 = vector.broadcast %cst_27 : f32 to vector<64x128xf32>
    %58 = arith.mulf %57, %56 : vector<64x128xf32>
    %cst_28 = arith.constant -1.45315206 : f32
    %59 = vector.broadcast %cst_28 : f32 to vector<64x128xf32>
    %60 = arith.addf %58, %59 : vector<64x128xf32>
    %61 = arith.mulf %60, %56 : vector<64x128xf32>
    %cst_29 = arith.constant 1.42141378 : f32
    %62 = vector.broadcast %cst_29 : f32 to vector<64x128xf32>
    %63 = arith.addf %61, %62 : vector<64x128xf32>
    %64 = arith.mulf %63, %56 : vector<64x128xf32>
    %cst_30 = arith.constant -0.284496725 : f32
    %65 = vector.broadcast %cst_30 : f32 to vector<64x128xf32>
    %66 = arith.addf %64, %65 : vector<64x128xf32>
    %67 = arith.mulf %66, %56 : vector<64x128xf32>
    %cst_31 = arith.constant 0.254829586 : f32
    %68 = vector.broadcast %cst_31 : f32 to vector<64x128xf32>
    %69 = arith.addf %67, %68 : vector<64x128xf32>
    %70 = arith.mulf %69, %56 : vector<64x128xf32>
    %cst_32 = arith.constant 0.000000e+00 : f32
    %71 = vector.broadcast %cst_32 : f32 to vector<64x128xf32>
    %72 = arith.subf %71, %50 : vector<64x128xf32>
    %73 = arith.mulf %72, %50 : vector<64x128xf32>
    %74 = math.exp %73 : vector<64x128xf32>
    %75 = arith.mulf %70, %74 : vector<64x128xf32>
    %cst_33 = arith.constant 1.000000e+00 : f32
    %76 = vector.broadcast %cst_33 : f32 to vector<64x128xf32>
    %77 = arith.subf %76, %75 : vector<64x128xf32>
    %cst_34 = arith.constant 0.000000e+00 : f32
    %78 = vector.broadcast %cst_34 : f32 to vector<64x128xf32>
    %79 = arith.cmpf oge, %49, %78 : vector<64x128xf32>
    %cst_35 = arith.constant 0.000000e+00 : f32
    %80 = vector.broadcast %cst_35 : f32 to vector<64x128xf32>
    %81 = arith.subf %80, %77 : vector<64x128xf32>
    %82 = arith.select %79, %77, %81 : vector<64x128xi1>, vector<64x128xf32>
    %cst_36 = arith.constant 5.000000e-01 : f32
    %83 = vector.broadcast %cst_36 : f32 to vector<64x128xf32>
    %84 = arith.mulf %83, %47 : vector<64x128xf32>
    %cst_37 = arith.constant 1.000000e+00 : f32
    %85 = vector.broadcast %cst_37 : f32 to vector<64x128xf32>
    %86 = arith.addf %85, %82 : vector<64x128xf32>
    %87 = arith.mulf %84, %86 : vector<64x128xf32>
    %c0_38 = arith.constant 0 : index
    %c0_39 = arith.constant 0 : index
    %88 = vector.load %arg5[%c0_38, %c0_39] : memref<64x128xf32, #tpu.memory_space<vmem>>, vector<64x128xf32>
    tpu.vector_store %arg5[%c0_38, %c0_39], %87 {strides = array<i32>} : memref<64x128xf32, #tpu.memory_space<vmem>>, vector<64x128xf32>,
    return
  }
  func.func @transform_0(%arg0: i32) -> (i32, i32) {
    %c0_i32 = arith.constant 0 : i32
    %c0_i32_0 = arith.constant 0 : i32
    return %arg0, %c0_i32 : i32, i32
  }
  func.func @transform_1(%arg0: i32) -> (i32, i32) {
    %c0_i32 = arith.constant 0 : i32
    %c0_i32_0 = arith.constant 0 : i32
    %c0_i32_1 = arith.constant 0 : i32
    return %c0_i32, %c0_i32_0 : i32, i32
  }
  func.func @transform_2(%arg0: i32) -> (i32, i32) {
    %c0_i32 = arith.constant 0 : i32
    %c0_i32_0 = arith.constant 0 : i32
    %c0_i32_1 = arith.constant 0 : i32
    return %c0_i32, %c0_i32_0 : i32, i32
  }
  func.func @transform_3(%arg0: i32) -> (i32, i32) {
    %c0_i32 = arith.constant 0 : i32
    %c0_i32_0 = arith.constant 0 : i32
    %c0_i32_1 = arith.constant 0 : i32
    return %c0_i32, %c0_i32_0 : i32, i32
  }
  func.func @transform_4(%arg0: i32) -> (i32, i32) {
    %c0_i32 = arith.constant 0 : i32
    %c0_i32_0 = arith.constant 0 : i32
    return %arg0, %c0_i32 : i32, i32
  }
}

</mosaic_0001>

<bundles_post_ra>
// kernel: tpu_custom_call.1
= control target key start
LH: loop header
LB: loop body
LE: loop exit
PB: predicated region body
PF: predicated region fallthrough
CT: control target
= control target key end

     0   :  { %9 = vsyncpa [#allocation3], 0  ;;  %s1925_s0 = inlined_call_operand.vmem [shape: f32[128,200], index: 0, kind: input, shape index: {}]   ;;  %s1926_s1 = inlined_call_operand.vmem [shape: f32[200,128], index: 1, kind: input, shape index: {}]   ;;  %s1927_s2 = inlined_call_operand.vmem [shape: f32[128,128], index: 2, kind: input, shape index: {}]   ;;  %s1928_s3 = inlined_call_operand.vmem [shape: f32[1,128], index: 3, kind: input, shape index: {}]   ;;  %s1929_s4 = inlined_call_operand.hbm [shape: f32[128,128], index: 4, kind: output, shape index: {}]  }
   0x1   :  { %11 = vsyncpa [#allocation3 + $0x1], 0  ;;  %s1378_s15 = smov 0   ;;  %s1380_s16 = smov 0  }
   0x2   :  { %s1382_s17 = smov 0   ;;  %s1384_s18 = smov 0  }
   0x3 LB: > { %s1399_s19 = sadd.s32 4294967295, %s1346_s18   ;;  %s1017_s20 = sadd.s32 4294967294, %s1346_s18   ;;  %s1346_s18 = sphi %s1384_s18, %s1935_s18   ;;  %s1342_s17 = sphi %s1382_s17, %s1934_s17   ;;  %s1338_s16 = sphi %s1380_s16, %s1933_s16   ;;  %s1334_s15 = sphi %s1378_s15, %s1932_s15  }
   0x4   : > { %s1403_s21 = sadd.s32 1, %s1346_s18   ;;  %s113_s22 = sadd.s32 1, %s1342_s17 }
   0x5   : > { %s110_s23 = ssub.s32 %s1346_s18, %s1403_s21  ;;  %p123_p0 = scmp.ne.s32.totalorder %s1342_s17, %s1338_s16 }
   0x6   : > { %p111_p1 = scmp.eq.s32.totalorder %s110_s23, 0  ;;  %p124_p2 = scmp.eq.s32.totalorder %s1399_s19, 1 }
   0x7   : > { %p129_p3 = scmp.ne.s32.totalorder %s1338_s16, %s1334_s15  ;;  %p130_p4 = scmp.eq.s32.totalorder %s1017_s20, 1 }
   0x8   : > { %s1414_s24 = scalar_select %p111_p1, %s1342_s17, %s113_s22  }
   0x9   : > { %p1416_p5 = por %p124_p2, %p123_p0  ;;  %p1420_p6 = por %p130_p4, %p129_p3 }
   0xa   : > { %p1020_p7 = scmp.ge.s32.totalorder %s1346_s18, 1  ;;  %p167_p8 = scmp.lt.s32.totalorder %s1346_s18, 3 }
   0xc   : > { %p168_p9 = pnand %p1020_p7, %p167_p8 }
   0xd   : > { %v218_v0 = vld [vmem:[%s1926_s1] sm:$0xff] (!%p168_p9)  ;;  %v219_v1 = vld [vmem:[%s1926_s1 + $0x8] sm:$0xff] (!%p168_p9)  ;;  %v220_v2 = vld [vmem:[%s1926_s1 + $0x10] sm:$0xff] (!%p168_p9)  ;;  %s1022_s7 = sshll.u32 (!%p168_p9), %s1399_s19, 3  ;;  %v1348_v3 = vmov (!%p168_p9), 0.0|0.0   ;;  %vm243_vm0 = vcmask (!%p168_p9), 588800  }
   0xe   : > { %171 = sbr.rel (%p168_p9) target bundleno = 634 (0x27a), region = 36  ;;  %1109 = vmatprep.subr.bf16.mxu0 (!%p168_p9), %v1348_v3  ;;  %v1110_v4 = vpack.c.bf16 (!%p168_p9), %v219_v1, %v218_v0  ;;  %v221_v5 = vld [vmem:[%s1926_s1 + $0x18] sm:$0xff] (!%p168_p9)  ;;  %p195_p10 = scmp.lt.s32.totalorder (!%p168_p9), %s1022_s7, 15  ;;  %v222_v7 = vld [vmem:[%s1926_s1 + $0x20] sm:$0xff] (!%p168_p9)  ;;  %v223_v8 = vld [vmem:[%s1926_s1 + $0x28] sm:$0xff] (!%p168_p9)  ;;  %v1349_v38 = vmov (!%p168_p9), 0.0  }
   0xf   : > { %v1113_v6 = vpack.c.bf16 (!%p168_p9), %v221_v5, %v220_v2  ;;  %v1116_v9 = vpack.c.bf16 (!%p168_p9), %v223_v8, %v222_v7  ;;  %v224_v10 = vld [vmem:[%s1926_s1 + $0x30] sm:$0xff] (!%p168_p9)  ;;  %v225_v11 = vld [vmem:[%s1926_s1 + $0x38] sm:$0xff] (!%p168_p9)  ;;  %v226_v14 = vld [vmem:[%s1926_s1 + $0x40] sm:$0xff] (!%p168_p9)  ;;  %s1040_s10 = sshll.u32 (!%p168_p9), %s1399_s19, 10  ;;  %s1350_s20 = smov (!%p168_p9), [#allocation2]  }
  0x10   : > { %1111 = vmatpush1.bf16.msra.mxu0 (!%p168_p9), %v1110_v4  ;;  %v1119_v13 = vpack.c.bf16 (!%p168_p9), %v225_v11, %v224_v10  ;;  %v227_v15 = vld [vmem:[%s1926_s1 + $0x48] sm:$0xff] (!%p168_p9)  ;;  %v228_v17 = vld [vmem:[%s1926_s1 + $0x50] sm:$0xff] (!%p168_p9)  ;;  %v229_v18 = vld [vmem:[%s1926_s1 + $0x58] sm:$0xff] (!%p168_p9)  ;;  %s1288_s22 = sshll.u32 (!%p168_p9), %s1350_s20, 4  ;;  %s1289_s22 = int_to_ptr.vmem [resolvable:$false] %s1288_s22 }
  0x11   : > { %1112 = vmatprep.subr.bf16.mxu0 (!%p168_p9), %v1348_v3  ;;  %v1122_v16 = vpack.c.bf16 (!%p168_p9), %v227_v15, %v226_v14  ;;  %v1125_v19 = vpack.c.bf16 (!%p168_p9), %v229_v18, %v228_v17  ;;  %v230_v20 = vld [vmem:[%s1926_s1 + $0x60] sm:$0xff] (!%p168_p9)  ;;  %v231_v21 = vld [vmem:[%s1926_s1 + $0x68] sm:$0xff] (!%p168_p9)  ;;  %v232_v23 = vld [vmem:[%s1926_s1 + $0x70] sm:$0xff] (!%p168_p9)  ;;  %s1290_s27 = scalar_lea.vmem (!%p168_p9), %s1289_s22, 2048 }
  0x12   : > { %v1128_v22 = vpack.c.bf16 (!%p168_p9), %v231_v21, %v230_v20  ;;  %v233_v24 = vld [vmem:[%s1926_s1 + $0x78] sm:$0xff] (!%p168_p9)  ;;  %v234_v26 = vld [vmem:[%s1926_s1 + $0x80] sm:$0xff] (!%p168_p9)  ;;  %v235_v27 = vld [vmem:[%s1926_s1 + $0x88] sm:$0xff] (!%p168_p9) }
  0x13   : > { %v1131_v25 = vpack.c.bf16 (!%p168_p9), %v233_v24, %v232_v23  ;;  %v1134_v28 = vpack.c.bf16 (!%p168_p9), %v235_v27, %v234_v26  ;;  %v236_v29 = vld [vmem:[%s1926_s1 + $0x90] sm:$0xff] (!%p168_p9)  ;;  %v237_v30 = vld [vmem:[%s1926_s1 + $0x98] sm:$0xff] (!%p168_p9)  ;;  %v238_v32 = vld [vmem:[%s1926_s1 + $0xa0] sm:$0xff] (!%p168_p9) }
  0x14   : > { %1114 = vmatpush1.bf16.msra.mxu0 (!%p168_p9), %v1113_v6  ;;  %v1137_v31 = vpack.c.bf16 (!%p168_p9), %v237_v30, %v236_v29  ;;  %v239_v33 = vld [vmem:[%s1926_s1 + $0xa8] sm:$0xff] (!%p168_p9)  ;;  %v240_v35 = vld [vmem:[%s1926_s1 + $0xb0] sm:$0xff] (!%p168_p9)  ;;  %v241_v36 = vld [vmem:[%s1926_s1 + $0xb8] sm:$0xff] (!%p168_p9) }
  0x15   : > { %s1937_s7 = smov (!%p195_p10, %s1022_s7), 15  ;;  %1115 = vmatprep.subr.bf16.mxu0 %v1348_v3  ;;  %v1140_v34 = vpack.c.bf16 %v239_v33, %v238_v32  ;;  %v1143_v37 = vpack.c.bf16 %v241_v36, %v240_v35  ;;  %v242_v39 = vld [vmem:[%s1926_s1 + $0xc0] sm:$0xff]  ;;  %v590_v56 = vld [vmem:[%s1927_s2 + $0x8] sm:$0xff]  ;;  %v591_v58 = vld [vmem:[%s1927_s2 + $0x10] sm:$0xff] }
  0x16   : > { %s1039_s14 = sshll.u32 %s1937_s7, 4  ;;  %v589_v55 = vld [vmem:[%s1927_s2] sm:$0xff]  ;;  %v592_v59 = vld [vmem:[%s1927_s2 + $0x18] sm:$0xff]  ;;  %v594_v62 = vld [vmem:[%s1927_s2 + $0x28] sm:$0xff]  ;;  %s191_s7 = sand.u32 1, %s1338_s16  }
  0x17   : > { %s1450_s23 = scalar_lea.vmem %s1925_s0, %s1039_s14  ;;  %v1145_v57 = vpack.c.bf16 %v590_v56, %v589_v55  ;;  %v1149_v60 = vpack.c.bf16 %v592_v59, %v591_v58  ;;  %v593_v61 = vld [vmem:[%s1927_s2 + $0x20] sm:$0xff]  ;;  %v595_v0 = vld [vmem:[%s1927_s2 + $0x30] sm:$0xff]  ;;  %v596_v1 = vld [vmem:[%s1927_s2 + $0x38] sm:$0xff]  ;;  %s1021_s8 = sshll.u32 %s191_s7, 6 }
  0x18   : > { %v203_v12 = vld [vmem:[%s1450_s23 + $0x8] sm:$0xff]  ;;  %1117 = vmatpush1.bf16.msra.mxu0 %v1116_v9  ;;  %v202_v40 = vld [vmem:[%s1450_s23] sm:$0xff]  ;;  %v205_v41 = vld [vmem:[%s1450_s23 + $0x18] sm:$0xff]  ;;  %v1153_v63 = vpack.c.bf16 %v594_v62, %v593_v61  ;;  %v1157_v2 = vpack.c.bf16 %v596_v1, %v595_v0  ;;  %s1843_s9 = scalar_lea.vmem [#allocation2], %s1021_s8  ;;  %s1877_s14 = scalar_lea.hbm %s1929_s4, %s1040_s10 }
  0x19   : > { %1025 = vmatprep.mubr.msk.f32.mxu0 %vm243_vm0, %v203_v12  ;;  %1118 = vmatprep.subr.bf16.mxu0 %v1348_v3  ;;  %v204_v42 = vld [vmem:[%s1450_s23 + $0x10] sm:$0xff]  ;;  %v207_v43 = vld [vmem:[%s1450_s23 + $0x28] sm:$0xff]  ;;  %v206_v44 = vld [vmem:[%s1450_s23 + $0x20] sm:$0xff]  ;;  %s955_s11 = sshll.u32 %s1843_s9, 4  ;;  %s1884_s19 = scalar_lea.sflag [#allocation3], %s191_s7  ;;  %s1879_s11 = int_to_ptr.vmem [resolvable:$true] %s955_s11 }
  0x1a   : > { %v209_v45 = vld [vmem:[%s1450_s23 + $0x38] sm:$0xff]  ;;  %v208_v46 = vld [vmem:[%s1450_s23 + $0x30] sm:$0xff]  ;;  %v211_v47 = vld [vmem:[%s1450_s23 + $0x48] sm:$0xff]  ;;  %1146 = vmatprep.subr.bf16.mxu1 %v1145_v57  ;;  %p1291_p0 = scmp.lt.s32.totalorder %s1879_s11, %s1289_s22 }
  0x1b   : > { %v210_v48 = vld [vmem:[%s1450_s23 + $0x40] sm:$0xff]  ;;  %v213_v49 = vld [vmem:[%s1450_s23 + $0x58] sm:$0xff]  ;;  %v212_v50 = vld [vmem:[%s1450_s23 + $0x50] sm:$0xff]  ;;  %1148 = vmatpush3.bf16.msra.mxu1 %v1145_v57 }
  0x1c   : > { %1120 = vmatpush1.bf16.msra.mxu0 %v1119_v13  ;;  %v215_v51 = vld [vmem:[%s1450_s23 + $0x68] sm:$0xff]  ;;  %v214_v52 = vld [vmem:[%s1450_s23 + $0x60] sm:$0xff]  ;;  %v217_v53 = vld [vmem:[%s1450_s23 + $0x78] sm:$0xff]  ;;  %1150 = vmatprep.subr.bf16.mxu1 %v1149_v60 }
  0x1d   : > { %1121 = vmatprep.subr.bf16.mxu0 %v1348_v3  ;;  %v216_v54 = vld [vmem:[%s1450_s23 + $0x70] sm:$0xff]  ;;  %v598_v4 = vld [vmem:[%s1927_s2 + $0x48] sm:$0xff]  ;;  %v600_v7 = vld [vmem:[%s1927_s2 + $0x58] sm:$0xff]  ;;  %s1284_s23 = scalar_lea.vmem %s1879_s11, 1024 }
  0x1e   : > { %v599_v6 = vld [vmem:[%s1927_s2 + $0x50] sm:$0xff]  ;;  %v601_v9 = vld [vmem:[%s1927_s2 + $0x60] sm:$0xff]  ;;  %v602_v10 = vld [vmem:[%s1927_s2 + $0x68] sm:$0xff]  ;;  %p1285_p11 = scmp.ne.s32.totalorder %s1879_s11, %s1284_s23  ;;  %p1292_p1 = scmp.lt.s32.totalorder %s1290_s27, %s1284_s23 }
  0x1f   : > { %1152 = vmatpush3.bf16.msra.mxu1 %v1149_v60  ;;  %v1165_v8 = vpack.c.bf16 %v600_v7, %v599_v6  ;;  %v1169_v11 = vpack.c.bf16 %v602_v10, %v601_v9  ;;  %v603_v12 = vld [vmem:[%s1927_s2 + $0x70] sm:$0xff]  ;;  %v604_v13 = vld [vmem:[%s1927_s2 + $0x78] sm:$0xff] }
  0x20   : > { %1123 = vmatpush1.bf16.msra.mxu0 %v1122_v16  ;;  %1154 = vmatprep.subr.bf16.mxu1 %v1153_v63  ;;  %v1173_v14 = vpack.c.bf16 %v604_v13, %v603_v12  ;;  %p1286_p12 = pnand %p1285_p11, %p1416_p5  ;;  %p1293_p2 = por %p1292_p1, %p1291_p0 }
  0x21   : > { %1124 = vmatprep.subr.bf16.mxu0 %v1348_v3 }
  0x22   : > { %p1287_p13 = pneg %p1286_p12 }
  0x23   : > { %1156 = vmatpush3.bf16.msra.mxu1 %v1153_v63 }
  0x24   : > { %1126 = vmatpush1.bf16.msra.mxu0 %v1125_v19  ;;  %1158 = vmatprep.subr.bf16.mxu1 %v1157_v2  ;;  %p1294_p3 = pnand %p1293_p2, %p1287_p13 }
  0x25   : > { %1127 = vmatprep.subr.bf16.mxu0 %v1348_v3 }
  0x27   : > { %1160 = vmatpush3.bf16.msra.mxu1 %v1157_v2 }
  0x28   : > { %1129 = vmatpush1.bf16.msra.mxu0 %v1128_v22 }
  0x29   : > { %1130 = vmatprep.subr.bf16.mxu0 %v1348_v3 }
  0x2c   : > { %1132 = vmatpush1.bf16.msra.mxu0 %v1131_v25 }
  0x2d   : > { %1133 = vmatprep.subr.bf16.mxu0 %v1348_v3 }
  0x30   : > { %1135 = vmatpush1.bf16.msra.mxu0 %v1134_v28 }
  0x31   : > { %1136 = vmatprep.subr.bf16.mxu0 %v1348_v3 }
  0x34   : > { %1138 = vmatpush1.bf16.msra.mxu0 %v1137_v31 }
  0x35   : > { %1139 = vmatprep.subr.bf16.mxu0 %v1348_v3 }
  0x38   : > { %1141 = vmatpush1.bf16.msra.mxu0 %v1140_v34 }
  0x39   : > { %1142 = vmatprep.subr.bf16.mxu0 %v1348_v3  ;;  %v597_v3 = vld [vmem:[%s1927_s2 + $0x40] sm:$0xff] }
  0x3a   : > { %v1161_v5 = vpack.c.bf16 %v598_v4, %v597_v3 }
  0x3c   : > { %1144 = vmatpush1.bf16.msra.mxu0 %v1143_v37  ;;  %1162 = vmatprep.subr.bf16.mxu1 %v1161_v5 }
  0x3d   : > { %316 = vmatprep.subr.mxu0 %v1349_v38  ;;  %1164 = vmatpush3.bf16.msra.mxu1 %v1161_v5 }
  0x3e   : > { %1166 = vmatprep.subr.bf16.mxu1 %v1165_v8 }
  0x40   : > { %317 = vmatpush1.msra.mxu0 %v242_v39 }
  0x41   : > { %333 = vmatmul.mubr.f32.vlgmr.msra.gmra.mrb[0].mxu0 %v202_v40  ;;  %1168 = vmatpush3.bf16.msra.mxu1 %v1165_v8 }
  0x42   : > { %1026 = vmatprep.mubr.msk.f32.mxu0 %vm243_vm0, %v205_v41  ;;  %1170 = vmatprep.subr.bf16.mxu1 %v1169_v11 }
  0x45   : > { %338 = vmatmul.mubr.f32.gmra.mrb[2].mxu0 %v204_v42  ;;  %1172 = vmatpush3.bf16.msra.mxu1 %v1169_v11 }
  0x46   : > { %1027 = vmatprep.mubr.msk.f32.mxu0 %vm243_vm0, %v207_v43  ;;  %1174 = vmatprep.subr.bf16.mxu1 %v1173_v14 }
  0x49   : > { %343 = vmatmul.mubr.f32.gmra.mrb[4].mxu0 %v206_v44  ;;  %1176 = vmatpush3.bf16.msra.mxu1 %v1173_v14 }
  0x4a   : > { %1028 = vmatprep.mubr.msk.f32.mxu0 %vm243_vm0, %v209_v45 }
  0x4d   : > { %348 = vmatmul.mubr.f32.gmra.mrb[6].mxu0 %v208_v46 }
  0x4e   : > { %1029 = vmatprep.mubr.msk.f32.mxu0 %vm243_vm0, %v211_v47 }
  0x51   : > { %353 = vmatmul.mubr.f32.gmra.mrb[8].mxu0 %v210_v48 }
  0x52   : > { %1030 = vmatprep.mubr.msk.f32.mxu0 %vm243_vm0, %v213_v49 }
  0x55   : > { %358 = vmatmul.mubr.f32.gmra.mrb[10].mxu0 %v212_v50 }
  0x56   : > { %1031 = vmatprep.mubr.msk.f32.mxu0 %vm243_vm0, %v215_v51 }
  0x59   : > { %363 = vmatmul.mubr.f32.gmra.mrb[12].mxu0 %v214_v52 }
  0x5a   : > { %1032 = vmatprep.mubr.msk.f32.mxu0 %vm243_vm0, %v217_v53 }
  0x5d   : > { %368 = vmatmul.mubr.f32.gmra.mrb[14].mxu0 %v216_v54 }
 0x114   : > { %v334_v15 = vpop.f32.mrb[0].mxu0 }
 0x115   : > { %v1591_v16 = vmul.f32 0.70710677, %v334_v15  ;;  %v336_v17 = vpop.f32.mrb[1].mxu0  ;;  %v1630_v2 = vmul.f32 0.5, %v334_v15 }
 0x117   : > { %v381_v18 = vand.u32 2147483647, %v1591_v16  ;;  %vm541_vm2 = vcmp.ge.f32.partialorder %v1591_v16, 0.0 }
 0x118   : > { %v339_v19 = vpop.f32.mrb[2].mxu0 }
 0x119   : > { %v389_v20 = vmul.f32 0.3275911, %v381_v18  ;;  %v1594_v21 = vmul.f32 0.70710677, %v339_v19  ;;  %v341_v22 = vpop.f32.mrb[3].mxu0  ;;  %v493_v35 = vsub.f32 0.0, %v381_v18 }
 0x11a   : > { %v1632_v6 = vmul.f32 0.5, %v339_v19 }
 0x11b   : > { %v397_v23 = vadd.f32 1.0, %v389_v20  ;;  %v382_v24 = vand.u32 2147483647, %v1594_v21  ;;  %v501_v44 = vmul.f32 %v493_v35, %v381_v18  ;;  %vm542_vm1 = vcmp.ge.f32.partialorder %v1594_v21, 0.0 }
 0x11c   : > { %v344_v25 = vpop.f32.mrb[4].mxu0 }
 0x11d   : > { %1220 = vrcp.f32 %v397_v23  ;;  %v390_v26 = vmul.f32 0.3275911, %v382_v24  ;;  %v346_v27 = vpop.f32.mrb[5].mxu0  ;;  %v1597_v28 = vmul.f32 0.70710677, %v344_v25  ;;  %v494_v39 = vsub.f32 0.0, %v382_v24 }
 0x11e   : > { %v509_v56 = vmul.f32 1.442695, %v501_v44  ;;  %v1640_v12 = vmul.f32 0.5, %v344_v25 }
 0x11f   : > { %v398_v29 = vadd.f32 1.0, %v390_v26  ;;  %v383_v30 = vand.u32 2147483647, %v1597_v28  ;;  %v502_v49 = vmul.f32 %v494_v39, %v382_v24  ;;  %vm543_vm3 = vcmp.ge.f32.partialorder %v1597_v28, 0.0 }
 0x120   : > { %v1600_v31 = vpop.f32.mrb[6].mxu0 }
 0x121   : > { %1222 = vrcp.f32 %v398_v29  ;;  %v1603_v32 = vmul.f32 0.70710677, %v1600_v31  ;;  %v351_v33 = vpop.f32.mrb[7].mxu0  ;;  %v391_v34 = vmul.f32 0.3275911, %v383_v30  ;;  %v495_v52 = vsub.f32 0.0, %v383_v30 }
 0x122   : > { %v511_v62 = vmul.f32 1.442695, %v502_v49 }
 0x123   : > { %v384_v36 = vand.u32 2147483647, %v1603_v32  ;;  %v399_v37 = vadd.f32 1.0, %v391_v34  ;;  %v503_v4 = vmul.f32 %v495_v52, %v383_v30  ;;  %v1655_v34 = vmul.f32 0.5, %v1600_v31 }
 0x124   : > { %v1606_v38 = vpop.f32.mrb[8].mxu0  ;;  %vm544_vm4 = vcmp.ge.f32.partialorder %v1603_v32, 0.0 }
 0x125   : > { %v392_v40 = vmul.f32 0.3275911, %v384_v36  ;;  %v1609_v41 = vmul.f32 0.70710677, %v1606_v38  ;;  %1224 = vrcp.f32 %v399_v37  ;;  %v356_v42 = vpop.f32.mrb[9].mxu0  ;;  %v496_v63 = vsub.f32 0.0, %v384_v36 }
 0x126   : > { %v513_v20 = vmul.f32 1.442695, %v503_v4 }
 0x127   : > { %v1611_v43 = vpop.eup %1220  ;;  %v400_v45 = vadd.f32 1.0, %v392_v40  ;;  %v385_v46 = vand.u32 2147483647, %v1609_v41  ;;  %v504_v17 = vmul.f32 %v496_v63, %v384_v36  ;;  %vm545_vm5 = vcmp.ge.f32.partialorder %v1609_v41, 0.0 }
 0x128   : > { %v1614_v47 = vpop.f32.mrb[10].mxu0  ;;  %v421_v48 = vmul.f32 1.0614054, %v1611_v43 }
 0x129   : > { %1226 = vrcp.f32 %v400_v45  ;;  %v393_v50 = vmul.f32 0.3275911, %v385_v46  ;;  %v361_v51 = vpop.f32.mrb[11].mxu0  ;;  %v1618_v53 = vmul.f32 0.70710677, %v1614_v47  ;;  %v497_v7 = vsub.f32 0.0, %v385_v46 }
 0x12a   : > { %v429_v54 = vadd.f32 -1.4531521, %v421_v48  ;;  %v515_v37 = vmul.f32 1.442695, %v504_v17 }
 0x12b   : > { %v1620_v55 = vpop.eup %1222  ;;  %v401_v57 = vadd.f32 1.0, %v393_v50  ;;  %v386_v59 = vand.u32 2147483647, %v1618_v53  ;;  %v505_v25 = vmul.f32 %v497_v7, %v385_v46  ;;  %vm546_vm6 = vcmp.ge.f32.partialorder %v1618_v53, 0.0 }
 0x12c   : > { %v422_v58 = vmul.f32 1.0614054, %v1620_v55  ;;  %v1624_v60 = vpop.f32.mrb[12].mxu0  ;;  %v437_v61 = vmul.f32 %v1611_v43, %v429_v54 }
 0x12d   : > { %1228 = vrcp.f32 %v401_v57  ;;  %v1628_v0 = vmul.f32 0.70710677, %v1624_v60  ;;  %v366_v1 = vpop.f32.mrb[13].mxu0  ;;  %v394_v5 = vmul.f32 0.3275911, %v386_v59  ;;  %v498_v39 = vsub.f32 0.0, %v386_v59 }
 0x12e   : > { %v430_v3 = vadd.f32 -1.4531521, %v422_v58  ;;  %v445_v9 = vadd.f32 1.4214138, %v437_v61  ;;  %1230 = vpow2.f32 %v509_v56  ;;  %v517_v48 = vmul.f32 1.442695, %v505_v25 }
 0x12f   : > { %v1635_v8 = vand.u32 2147483647, %v1628_v0  ;;  %v1637_v10 = vpop.eup %1224  ;;  %v402_v13 = vadd.f32 1.0, %v394_v5  ;;  %1232 = vpow2.f32 %v511_v62  ;;  %v506_v56 = vmul.f32 %v498_v39, %v386_v59 }
 0x130   : > { %v438_v11 = vmul.f32 %v1620_v55, %v430_v3  ;;  %v1642_v14 = vpop.f32.mrb[14].mxu0  ;;  %v423_v15 = vmul.f32 1.0614054, %v1637_v10  ;;  %v453_v29 = vmul.f32 %v1611_v43, %v445_v9  ;;  %vm547_vm7 = vcmp.ge.f32.partialorder %v1628_v0, 0.0  ;;  %v1725_v0 = vld [vmem:[%s1928_s3] ss:$0 sm:$0xff] }
 0x131   : > { %v395_v18 = vmul.f32 0.3275911, %v1635_v8  ;;  %1234 = vrcp.f32 %v402_v13  ;;  %v1647_v22 = vmul.f32 0.70710677, %v1642_v14  ;;  %v371_v27 = vpop.f32.mrb[15].mxu0  ;;  %v499_v57 = vsub.f32 0.0, %v1635_v8 }
 0x132   : > { %v446_v19 = vadd.f32 1.4214138, %v438_v11  ;;  %v431_v24 = vadd.f32 -1.4531521, %v423_v15  ;;  %v461_v49 = vadd.f32 -0.28449672, %v453_v29 }
 0x133   : > { %v1649_v23 = vpop.eup %1226  ;;  %v403_v26 = vadd.f32 1.0, %v395_v18  ;;  %v388_v35 = vand.u32 2147483647, %v1647_v22  ;;  %v507_v18 = vmul.f32 %v499_v57, %v1635_v8  ;;  %vm548_vm8 = vcmp.ge.f32.partialorder %v1647_v22, 0.0 }
 0x134   : > { %v454_v30 = vmul.f32 %v1620_v55, %v446_v19  ;;  %v424_v33 = vmul.f32 1.0614054, %v1649_v23  ;;  %v439_v36 = vmul.f32 %v1637_v10, %v431_v24  ;;  %v469_v58 = vmul.f32 %v1611_v43, %v461_v49 }
 0x135   : > { %1236 = vrcp.f32 %v403_v26  ;;  %v396_v44 = vmul.f32 0.3275911, %v388_v35  ;;  %v500_v5 = vsub.f32 0.0, %v388_v35  ;;  %v519_v26 = vmul.f32 1.442695, %v506_v56 }
 0x136   : > { %v462_v40 = vadd.f32 -0.28449672, %v454_v30  ;;  %v432_v42 = vadd.f32 -1.4531521, %v424_v33  ;;  %v447_v46 = vadd.f32 1.4214138, %v439_v36  ;;  %1238 = vpow2.f32 %v513_v20 }
 0x137   : > { %v1659_v45 = vpop.eup %1228  ;;  %v404_v52 = vadd.f32 1.0, %v396_v44  ;;  %v477_v7 = vadd.f32 0.2548296, %v469_v58  ;;  %v508_v30 = vmul.f32 %v500_v5, %v388_v35  ;;  %v521_v44 = vmul.f32 1.442695, %v507_v18 }
 0x138   : > { %v470_v50 = vmul.f32 %v1620_v55, %v462_v40  ;;  %v440_v31 = vmul.f32 %v1649_v23, %v432_v42  ;;  %v425_v51 = vmul.f32 1.0614054, %v1659_v45  ;;  %v455_v54 = vmul.f32 %v1637_v10, %v447_v46  ;;  %v1231_v61 = vpop.eup %1230 }
 0x139   : > { %1240 = vrcp.f32 %v404_v52  ;;  %v1233_v3 = vpop.eup %1232  ;;  %v485_v19 = vmul.f32 %v1611_v43, %v477_v7  ;;  %v523_v58 = vmul.f32 1.442695, %v508_v30 }
 0x13a   : > { %v478_v62 = vadd.f32 0.2548296, %v470_v50  ;;  %v448_v63 = vadd.f32 1.4214138, %v440_v31  ;;  %v433_v1 = vadd.f32 -1.4531521, %v425_v51  ;;  %1242 = vpow2.f32 %v515_v37 }
 0x13b   : > { %v463_v4 = vadd.f32 -0.28449672, %v455_v54  ;;  %v1668_v9 = vpop.eup %1234  ;;  %1244 = vpow2.f32 %v517_v48  ;;  %v525_v33 = vmul.f32 %v1231_v61, %v485_v19 }
 0x13c   : > { %v486_v59 = vmul.f32 %v1620_v55, %v478_v62  ;;  %v456_v11 = vmul.f32 %v1649_v23, %v448_v63  ;;  %v441_v13 = vmul.f32 %v1659_v45, %v433_v1  ;;  %v426_v17 = vmul.f32 1.0614054, %v1668_v9 }
 0x13d   : > { %v471_v15 = vmul.f32 %v1637_v10, %v463_v4  ;;  %v533_v46 = vsub.f32 1.0, %v525_v33  ;;  %1246 = vpow2.f32 %v519_v26 }
 0x13e   : > { %v526_v20 = vmul.f32 %v1233_v3, %v486_v59  ;;  %v464_v24 = vadd.f32 -0.28449672, %v456_v11  ;;  %v449_v25 = vadd.f32 1.4214138, %v441_v13  ;;  %v434_v29 = vadd.f32 -1.4531521, %v426_v17 }
 0x13f   : > { %v1678_v55 = vpop.eup %1236  ;;  %v479_v27 = vadd.f32 0.2548296, %v471_v15  ;;  %v549_v52 = vsub.f32 0.0, %v533_v46  ;;  %1248 = vpow2.f32 %v521_v44 }
 0x140   : > { %v534_v36 = vsub.f32 1.0, %v526_v20  ;;  %v472_v37 = vmul.f32 %v1649_v23, %v464_v24  ;;  %v457_v39 = vmul.f32 %v1659_v45, %v449_v25  ;;  %v427_v8 = vmul.f32 1.0614054, %v1678_v55  ;;  %v1239_v43 = vpop.eup %1238 }
 0x141   : > { %v487_v40 = vmul.f32 %v1637_v10, %v479_v27  ;;  %v442_v42 = vmul.f32 %v1668_v9, %v434_v29  ;;  %v557_v21 = vsel %vm541_vm2, %v533_v46, %v549_v52  ;;  %1250 = vpow2.f32 %v523_v58 }
 0x142   : > { %v550_v48 = vsub.f32 0.0, %v534_v36  ;;  %v480_v49 = vadd.f32 0.2548296, %v472_v37  ;;  %v465_v35 = vadd.f32 -0.28449672, %v457_v39  ;;  %v573_v19 = vadd.f32 1.0, %v557_v21 }
 0x143   : > { %v527_v50 = vmul.f32 %v1239_v43, %v487_v40  ;;  %v450_v31 = vadd.f32 1.4214138, %v442_v42  ;;  %v435_v51 = vadd.f32 -1.4531521, %v427_v8  ;;  %v1686_v54 = vpop.eup %1240 }
 0x144   : > { %v558_v56 = vsel %vm542_vm1, %v534_v36, %v550_v48  ;;  %v488_v57 = vmul.f32 %v1649_v23, %v480_v49  ;;  %v473_v10 = vmul.f32 %v1659_v45, %v465_v35  ;;  %v1243_v61 = vpop.eup %1242  ;;  %v428_v59 = vmul.f32 1.0614054, %v1686_v54 }
 0x145   : > { %v574_v62 = vadd.f32 1.0, %v558_v56  ;;  %v535_v63 = vsub.f32 1.0, %v527_v50  ;;  %v458_v1 = vmul.f32 %v1668_v9, %v450_v31  ;;  %v443_v3 = vmul.f32 %v1678_v55, %v435_v51  ;;  %v1245_v4 = vpop.eup %1244 }
 0x146   : > { %v528_v5 = vmul.f32 %v1243_v61, %v488_v57  ;;  %v481_v7 = vadd.f32 0.2548296, %v473_v10  ;;  %v436_v18 = vadd.f32 -1.4531521, %v428_v59  ;;  %v581_v36 = vmul.f32 %v573_v19, %v1630_v2 }
 0x147   : > { %v551_v11 = vsub.f32 0.0, %v535_v63  ;;  %v466_v23 = vadd.f32 -0.28449672, %v458_v1  ;;  %v451_v13 = vadd.f32 1.4214138, %v443_v3  ;;  %v582_v20 = vmul.f32 %v574_v62, %v1632_v6  ;;  %v1247_v37 = vpop.eup %1246 }
 0x148   : > { %v536_v15 = vsub.f32 1.0, %v528_v5  ;;  %v489_v17 = vmul.f32 %v1659_v45, %v481_v7  ;;  %v444_v30 = vmul.f32 %v1686_v54, %v436_v18  ;;  %1097 = vmatprep.mubr.f32.mxu1 %v581_v36  ;;  %v570_v61 = vmul.f32 0.5, %v1614_v47 }
 0x149   : > { %v559_v24 = vsel %vm543_vm3, %v535_v63, %v551_v11  ;;  %v474_v25 = vmul.f32 %v1668_v9, %v466_v23  ;;  %v459_v26 = vmul.f32 %v1678_v55, %v451_v13  ;;  %1098 = vmatmul.mubr.f32.vlgmr.msra.gmra.mrb[0].mxu1 %v582_v20  ;;  %v1249_v35 = vpop.eup %1248  ;;  %v571_v5 = vmul.f32 0.5, %v1624_v60 }
 0x14a   : > { %v575_v16 = vadd.f32 1.0, %v559_v24  ;;  %v552_v27 = vsub.f32 0.0, %v536_v15  ;;  %v529_v29 = vmul.f32 %v1245_v4, %v489_v17  ;;  %v452_v8 = vadd.f32 1.4214138, %v444_v30 }
 0x14b   : > { %v482_v33 = vadd.f32 0.2548296, %v474_v25  ;;  %v467_v45 = vadd.f32 -0.28449672, %v459_v26  ;;  %v1251_v63 = vpop.eup %1250 }
 0x14c   : > { %v583_v6 = vmul.f32 %v575_v16, %v1640_v12  ;;  %v560_v28 = vsel %vm544_vm4, %v536_v15, %v552_v27  ;;  %v537_v39 = vsub.f32 1.0, %v529_v29  ;;  %v460_v32 = vmul.f32 %v1686_v54, %v452_v8 }
 0x14d   : > { %v576_v43 = vadd.f32 1.0, %v560_v28  ;;  %v490_v40 = vmul.f32 %v1668_v9, %v482_v33  ;;  %v475_v42 = vmul.f32 %v1678_v55, %v467_v45  ;;  %v569_v9 = vmul.f32 0.5, %v1606_v38 }
 0x14e   : > { %v553_v44 = vsub.f32 0.0, %v537_v39  ;;  %1100 = vmatprep.mubr.f32.mxu1 %v583_v6  ;;  %v468_v49 = vadd.f32 -0.28449672, %v460_v32 }
 0x14f   : > { %v584_v46 = vmul.f32 %v576_v43, %v1655_v34  ;;  %v530_v2 = vmul.f32 %v1247_v37, %v490_v40  ;;  %v483_v12 = vadd.f32 0.2548296, %v475_v42 }
 0x150   : > { %v561_v48 = vsel %vm545_vm5, %v537_v39, %v553_v44  ;;  %v476_v52 = vmul.f32 %v1686_v54, %v468_v49 }
 0x151   : > { %v577_v50 = vadd.f32 1.0, %v561_v48  ;;  %v538_v31 = vsub.f32 1.0, %v530_v2  ;;  %v491_v51 = vmul.f32 %v1678_v55, %v483_v12  ;;  %1101 = vmatmul.mubr.f32.gmra.mrb[2].mxu1 %v584_v46 }
 0x152   : > { %v484_v41 = vadd.f32 0.2548296, %v476_v52 }
 0x153   : > { %v585_v56 = vmul.f32 %v577_v50, %v569_v9  ;;  %v554_v57 = vsub.f32 0.0, %v538_v31  ;;  %v531_v34 = vmul.f32 %v1249_v35, %v491_v51 }
 0x154   : > { %v492_v38 = vmul.f32 %v1686_v54, %v484_v41  ;;  %v572_v54 = vmul.f32 0.5, %v1642_v14 }
 0x155   : > { %v562_v10 = vsel %vm546_vm6, %v538_v31, %v554_v57  ;;  %v539_v58 = vsub.f32 1.0, %v531_v34  ;;  %1103 = vmatprep.mubr.f32.mxu1 %v585_v56 }
 0x156   : > { %v578_v62 = vadd.f32 1.0, %v562_v10  ;;  %v532_v3 = vmul.f32 %v1251_v63, %v492_v38 }
 0x157   : > { %v555_v1 = vsub.f32 0.0, %v539_v58 }
 0x158   : > { %v586_v55 = vmul.f32 %v578_v62, %v570_v61  ;;  %v540_v53 = vsub.f32 1.0, %v532_v3 }
 0x159   : > { %v563_v4 = vsel %vm547_vm7, %v539_v58, %v555_v1 }
 0x15a   : > { %v579_v7 = vadd.f32 1.0, %v563_v4  ;;  %1104 = vmatmul.mubr.f32.gmra.mrb[4].mxu1 %v586_v55  ;;  %v556_v21 = vsub.f32 0.0, %v540_v53 }
 0x15c   : > { %v587_v59 = vmul.f32 %v579_v7, %v571_v5  ;;  %v564_v47 = vsel %vm548_vm8, %v540_v53, %v556_v21 }
 0x15d   : > { %v580_v11 = vadd.f32 1.0, %v564_v47 }
 0x15e   : > { %1106 = vmatprep.mubr.f32.mxu1 %v587_v59 }
 0x15f   : > { %v588_v23 = vmul.f32 %v580_v11, %v572_v54 }
 0x161   : > { %1107 = vmatmul.mubr.f32.gmra.mrb[6].mxu1 %v588_v23 }
 0x21c   : > { %v1099_v60 = vpop.f32.mrb[0].mxu1 }
 0x21d   : > { %v684_v13 = vadd.f32 %v1099_v60, %v1725_v0  ;;  %v678_v15 = vpop.f32.mrb[1].mxu1 }
 0x21e   : > { %v679_v17 = vadd.f32 %v1725_v0, %v678_v15 }
 0x21f   : > { %v1729_v18 = vmul.f32 0.70710677, %v684_v13  ;;  %v1760_v56 = vmul.f32 0.5, %v684_v13 }
 0x220   : > { %v1731_v22 = vmul.f32 0.70710677, %v679_v17  ;;  %v1762_v57 = vmul.f32 0.5, %v679_v17 }
 0x221   : > { %v726_v14 = vand.u32 2147483647, %v1729_v18  ;;  %vm886_vm9 = vcmp.ge.f32.partialorder %v1729_v18, 0.0 }
 0x222   : > { %v725_v25 = vand.u32 2147483647, %v1731_v22  ;;  %vm885_vm10 = vcmp.ge.f32.partialorder %v1731_v22, 0.0 }
 0x223   : > { %v734_v16 = vmul.f32 0.3275911, %v726_v14  ;;  %v838_v45 = vsub.f32 0.0, %v726_v14 }
 0x224   : > { %v1102_v19 = vpop.f32.mrb[2].mxu1  ;;  %v733_v29 = vmul.f32 0.3275911, %v725_v25  ;;  %v837_v40 = vsub.f32 0.0, %v725_v25 }
 0x225   : > { %v694_v20 = vadd.f32 %v1102_v19, %v1725_v0  ;;  %v688_v24 = vpop.f32.mrb[3].mxu1  ;;  %v742_v33 = vadd.f32 1.0, %v734_v16  ;;  %v846_v43 = vmul.f32 %v838_v45, %v726_v14 }
 0x226   : > { %v1737_v26 = vadd.f32 %v1725_v0, %v688_v24  ;;  %v741_v37 = vadd.f32 1.0, %v733_v29  ;;  %v845_v9 = vmul.f32 %v837_v40, %v725_v25 }
 0x227   : > { %v1739_v27 = vmul.f32 0.70710677, %v694_v20  ;;  %1252 = vrcp.f32 %v742_v33  ;;  %v855_v35 = vmul.f32 1.442695, %v846_v43  ;;  %v1766_v61 = vmul.f32 0.5, %v694_v20 }
 0x228   : > { %v1742_v30 = vmul.f32 0.70710677, %v1737_v26  ;;  %1254 = vrcp.f32 %v741_v37  ;;  %v853_v58 = vmul.f32 1.442695, %v845_v9 }
 0x229   : > { %v728_v36 = vand.u32 2147483647, %v1739_v27  ;;  %vm888_vm11 = vcmp.ge.f32.partialorder %v1739_v27, 0.0 }
 0x22a   : > { %v727_v6 = vand.u32 2147483647, %v1742_v30  ;;  %vm887_vm12 = vcmp.ge.f32.partialorder %v1742_v30, 0.0 }
 0x22b   : > { %v736_v28 = vmul.f32 0.3275911, %v728_v36  ;;  %v840_v48 = vsub.f32 0.0, %v728_v36 }
 0x22c   : > { %v735_v39 = vmul.f32 0.3275911, %v727_v6  ;;  %v839_v31 = vsub.f32 0.0, %v727_v6 }
 0x22d   : > { %v1105_v8 = vpop.f32.mrb[4].mxu1  ;;  %v744_v42 = vadd.f32 1.0, %v736_v28  ;;  %v848_v34 = vmul.f32 %v840_v48, %v728_v36 }
 0x22e   : > { %v1747_v44 = vadd.f32 %v1105_v8, %v1725_v0  ;;  %v698_v32 = vpop.f32.mrb[5].mxu1  ;;  %v743_v46 = vadd.f32 1.0, %v735_v39  ;;  %v847_v55 = vmul.f32 %v839_v31, %v727_v6 }
 0x22f   : > { %v1750_v2 = vadd.f32 %v1725_v0, %v698_v32  ;;  %1256 = vrcp.f32 %v744_v42  ;;  %v859_v47 = vmul.f32 1.442695, %v848_v34 }
 0x230   : > { %v1753_v12 = vmul.f32 0.70710677, %v1747_v44  ;;  %1258 = vrcp.f32 %v743_v46  ;;  %v857_v19 = vmul.f32 1.442695, %v847_v55 }
 0x231   : > { %v1756_v49 = vmul.f32 0.70710677, %v1750_v2  ;;  %v1764_v10 = vpop.eup %1252  ;;  %1260 = vpow2.f32 %v855_v35 }
 0x232   : > { %v730_v50 = vand.u32 2147483647, %v1753_v12  ;;  %v1768_v63 = vpop.eup %1254  ;;  %v766_v1 = vmul.f32 1.0614054, %v1764_v10  ;;  %vm890_vm13 = vcmp.ge.f32.partialorder %v1753_v12, 0.0 }
 0x233   : > { %v729_v51 = vand.u32 2147483647, %v1756_v49  ;;  %v765_v7 = vmul.f32 1.0614054, %v1768_v63  ;;  %vm889_vm14 = vcmp.ge.f32.partialorder %v1756_v49, 0.0 }
 0x234   : > { %v738_v52 = vmul.f32 0.3275911, %v730_v50  ;;  %v1108_v38 = vpop.f32.mrb[6].mxu1  ;;  %v842_v53 = vsub.f32 0.0, %v730_v50  ;;  %v774_v21 = vadd.f32 -1.4531521, %v766_v1 }
 0x235   : > { %v737_v41 = vmul.f32 0.3275911, %v729_v51  ;;  %v1772_v4 = vadd.f32 %v1108_v38, %v1725_v0  ;;  %v708_v5 = vpop.f32.mrb[7].mxu1  ;;  %v773_v23 = vadd.f32 -1.4531521, %v765_v7  ;;  %v841_v60 = vsub.f32 0.0, %v729_v51 }
 0x236   : > { %v746_v62 = vadd.f32 1.0, %v738_v52  ;;  %v1776_v59 = vadd.f32 %v1725_v0, %v708_v5  ;;  %v782_v17 = vmul.f32 %v1764_v10, %v774_v21  ;;  %v850_v25 = vmul.f32 %v842_v53, %v730_v50 }
 0x237   : > { %v745_v3 = vadd.f32 1.0, %v737_v41  ;;  %v1779_v54 = vmul.f32 0.70710677, %v1772_v4  ;;  %v781_v20 = vmul.f32 %v1768_v63, %v773_v23  ;;  %v849_v6 = vmul.f32 %v841_v60, %v729_v51 }
 0x238   : > { %1262 = vrcp.f32 %v746_v62  ;;  %v1784_v13 = vmul.f32 0.70710677, %v1776_v59  ;;  %v790_v29 = vadd.f32 1.4214138, %v782_v17  ;;  %v863_v48 = vmul.f32 1.442695, %v850_v25 }
 0x239   : > { %1264 = vrcp.f32 %v745_v3  ;;  %v1781_v11 = vpop.eup %1256  ;;  %v732_v14 = vand.u32 2147483647, %v1779_v54  ;;  %v789_v36 = vadd.f32 1.4214138, %v781_v20  ;;  %v861_v34 = vmul.f32 1.442695, %v849_v6 }
 0x23a   : > { %1266 = vpow2.f32 %v853_v58  ;;  %v1786_v15 = vpop.eup %1258  ;;  %v768_v0 = vmul.f32 1.0614054, %v1781_v11  ;;  %v731_v16 = vand.u32 2147483647, %v1784_v13  ;;  %v798_v39 = vmul.f32 %v1764_v10, %v790_v29 }
 0x23b   : > { %v767_v24 = vmul.f32 1.0614054, %v1786_v15  ;;  %1268 = vpow2.f32 %v859_v47  ;;  %v740_v45 = vmul.f32 0.3275911, %v732_v14  ;;  %v844_v28 = vsub.f32 0.0, %v732_v14  ;;  %v1261_v42 = vpop.eup %1260 }
 0x23c   : > { %v776_v33 = vadd.f32 -1.4531521, %v768_v0  ;;  %v739_v40 = vmul.f32 0.3275911, %v731_v16  ;;  %v797_v32 = vmul.f32 %v1768_v63, %v789_v36  ;;  %1270 = vpow2.f32 %v857_v19 }
 0x23d   : > { %v775_v37 = vadd.f32 -1.4531521, %v767_v24  ;;  %v748_v43 = vadd.f32 1.0, %v740_v45  ;;  %v806_v35 = vadd.f32 -0.28449672, %v798_v39  ;;  %v852_v41 = vmul.f32 %v844_v28, %v732_v14 }
 0x23e   : > { %v784_v8 = vmul.f32 %v1781_v11, %v776_v33  ;;  %v747_v50 = vadd.f32 1.0, %v739_v40  ;;  %v805_v51 = vadd.f32 -0.28449672, %v797_v32  ;;  %v843_v53 = vsub.f32 0.0, %v731_v16 }
 0x23f   : > { %v783_v46 = vmul.f32 %v1786_v15, %v775_v37  ;;  %1272 = vrcp.f32 %v748_v43  ;;  %v814_v62 = vmul.f32 %v1764_v10, %v806_v35  ;;  %v867_v25 = vmul.f32 1.442695, %v852_v41 }
 0x240   : > { %v792_v9 = vadd.f32 1.4214138, %v784_v8  ;;  %1274 = vrcp.f32 %v747_v50  ;;  %v813_v3 = vmul.f32 %v1768_v63, %v805_v51  ;;  %v851_v28 = vmul.f32 %v843_v53, %v731_v16 }
 0x241   : > { %v791_v52 = vadd.f32 1.4214138, %v783_v46  ;;  %v822_v21 = vadd.f32 0.2548296, %v814_v62  ;;  %1276 = vpow2.f32 %v863_v48  ;;  %vm892_vm15 = vcmp.ge.f32.partialorder %v1779_v54, 0.0 }
 0x242   : > { %v1798_v31 = vpop.eup %1262  ;;  %v800_v38 = vmul.f32 %v1781_v11, %v792_v9  ;;  %v821_v60 = vadd.f32 0.2548296, %v813_v3  ;;  %1278 = vpow2.f32 %v861_v34  ;;  %v865_v34 = vmul.f32 1.442695, %v851_v28 }
 0x243   : > { %v1800_v58 = vpop.eup %1264  ;;  %v770_v1 = vmul.f32 1.0614054, %v1798_v31  ;;  %v799_v5 = vmul.f32 %v1786_v15, %v791_v52  ;;  %v830_v14 = vmul.f32 %v1764_v10, %v822_v21  ;;  %1280 = vpow2.f32 %v867_v25 }
 0x244   : > { %v1267_v55 = vpop.eup %1266  ;;  %v769_v7 = vmul.f32 1.0614054, %v1800_v58  ;;  %v808_v47 = vadd.f32 -0.28449672, %v800_v38  ;;  %v829_v29 = vmul.f32 %v1768_v63, %v821_v60  ;;  %1282 = vpow2.f32 %v865_v34 }
 0x245   : > { %v778_v23 = vadd.f32 -1.4531521, %v770_v1  ;;  %v807_v17 = vadd.f32 -0.28449672, %v799_v5  ;;  %v1269_v19 = vpop.eup %1268  ;;  %v870_v36 = vmul.f32 %v1261_v42, %v830_v14  ;;  %v913_v34 = vmul.f32 0.5, %v1750_v2 }
 0x246   : > { %v777_v0 = vadd.f32 -1.4531521, %v769_v7  ;;  %v816_v20 = vmul.f32 %v1781_v11, %v808_v47  ;;  %v1271_v10 = vpop.eup %1270  ;;  %v869_v39 = vmul.f32 %v1267_v55, %v829_v29  ;;  %vm891_vm0 = vcmp.ge.f32.partialorder %v1784_v13, 0.0 }
 0x247   : > { %v786_v24 = vmul.f32 %v1798_v31, %v778_v23  ;;  %v815_v33 = vmul.f32 %v1786_v15, %v807_v17  ;;  %v878_v63 = vsub.f32 1.0, %v870_v36 }
 0x248   : > { %v785_v45 = vmul.f32 %v1800_v58, %v777_v0  ;;  %v824_v37 = vadd.f32 0.2548296, %v816_v20  ;;  %v877_v16 = vsub.f32 1.0, %v869_v39 }
 0x249   : > { %v794_v6 = vadd.f32 1.4214138, %v786_v24  ;;  %v823_v8 = vadd.f32 0.2548296, %v815_v33  ;;  %v1817_v40 = vpop.eup %1272  ;;  %v894_v50 = vsub.f32 0.0, %v878_v63 }
 0x24a   : > { %v793_v43 = vadd.f32 1.4214138, %v785_v45  ;;  %v832_v32 = vmul.f32 %v1781_v11, %v824_v37  ;;  %v772_v35 = vmul.f32 1.0614054, %v1817_v40  ;;  %v1826_v9 = vpop.eup %1274  ;;  %v893_v11 = vsub.f32 0.0, %v877_v16 }
 0x24b   : > { %v802_v42 = vmul.f32 %v1798_v31, %v794_v6  ;;  %v831_v46 = vmul.f32 %v1786_v15, %v823_v8  ;;  %v902_v1 = vsel %vm886_vm9, %v878_v63, %v894_v50  ;;  %v771_v3 = vmul.f32 1.0614054, %v1826_v9  ;;  %v1277_v0 = vpop.eup %1276 }
 0x24c   : > { %v801_v48 = vmul.f32 %v1800_v58, %v793_v43  ;;  %v872_v51 = vmul.f32 %v1269_v19, %v832_v32  ;;  %v780_v38 = vadd.f32 -1.4531521, %v772_v35  ;;  %v918_v5 = vadd.f32 1.0, %v902_v1  ;;  %v1279_v33 = vpop.eup %1278 }
 0x24d   : > { %v810_v52 = vadd.f32 -0.28449672, %v802_v42  ;;  %v871_v41 = vmul.f32 %v1271_v10, %v831_v46  ;;  %v901_v7 = vsel %vm885_vm10, %v877_v16, %v893_v11  ;;  %v779_v20 = vadd.f32 -1.4531521, %v771_v3  ;;  %v1281_v27 = vpop.eup %1280 }
 0x24e   : > { %v809_v62 = vadd.f32 -0.28449672, %v801_v48  ;;  %v880_v15 = vsub.f32 1.0, %v872_v51  ;;  %v917_v47 = vadd.f32 1.0, %v901_v7  ;;  %v788_v17 = vmul.f32 %v1817_v40, %v780_v38 }
 0x24f   : > { %v818_v55 = vmul.f32 %v1798_v31, %v810_v52  ;;  %v879_v53 = vsub.f32 1.0, %v871_v41  ;;  %v926_v18 = vmul.f32 %v918_v5, %v1760_v56  ;;  %v914_v35 = vmul.f32 0.5, %v1747_v44 }
 0x250   : > { %v817_v21 = vmul.f32 %v1800_v58, %v809_v62  ;;  %v896_v23 = vsub.f32 0.0, %v880_v15  ;;  %v925_v24 = vmul.f32 %v917_v47, %v1762_v57  ;;  %v796_v29 = vadd.f32 1.4214138, %v788_v17 }
 0x251   : > { %v826_v60 = vadd.f32 0.2548296, %v818_v55  ;;  %v895_v19 = vsub.f32 0.0, %v879_v53  ;;  %934 = vst [vmem:[%s1843_s9 + $0x8] sm:$0xff] %v926_v18  ;;  %v787_v57 = vmul.f32 %v1826_v9, %v779_v20  ;;  %v916_v5 = vmul.f32 0.5, %v1772_v4 }
 0x252   : > { %v825_v14 = vadd.f32 0.2548296, %v817_v21  ;;  %v904_v22 = vsel %vm888_vm11, %v880_v15, %v896_v23  ;;  %933 = vst [vmem:[%s1843_s9] sm:$0xff] %v925_v24  ;;  %v804_v28 = vmul.f32 %v1817_v40, %v796_v29  ;;  %v1283_v15 = vpop.eup %1282  ;;  %v915_v47 = vmul.f32 0.5, %v1776_v59 }
 0x253   : > { %v834_v25 = vmul.f32 %v1798_v31, %v826_v60  ;;  %v920_v45 = vadd.f32 1.0, %v904_v22  ;;  %v903_v56 = vsel %vm887_vm12, %v879_v53, %v895_v19  ;;  %v911_v31 = vmul.f32 0.5, %v1737_v26 }
 0x254   : > { %v833_v36 = vmul.f32 %v1800_v58, %v825_v14  ;;  %v919_v37 = vadd.f32 1.0, %v903_v56  ;;  %v795_v8 = vadd.f32 1.4214138, %v787_v57  ;;  %v812_v63 = vadd.f32 -0.28449672, %v804_v28 }
 0x255   : > { %v874_v6 = vmul.f32 %v1277_v0, %v834_v25  ;;  %v928_v10 = vmul.f32 %v920_v45, %v1766_v61 }
 0x256   : > { %v873_v39 = vmul.f32 %v1279_v33, %v833_v36  ;;  %v927_v30 = vmul.f32 %v919_v37, %v911_v31  ;;  %v803_v32 = vmul.f32 %v1826_v9, %v795_v8  ;;  %v820_v26 = vmul.f32 %v1817_v40, %v812_v63 }
 0x257   : > { %v882_v43 = vsub.f32 1.0, %v874_v6  ;;  %936 = vst [vmem:[%s1843_s9 + $0x18] sm:$0xff] %v928_v10 }
 0x258   : > { %v881_v58 = vsub.f32 1.0, %v873_v39  ;;  %935 = vst [vmem:[%s1843_s9 + $0x10] sm:$0xff] %v927_v30  ;;  %v811_v46 = vadd.f32 -0.28449672, %v803_v32  ;;  %v828_v48 = vadd.f32 0.2548296, %v820_v26 }
 0x259   : > { %v898_v42 = vsub.f32 0.0, %v882_v43 }
 0x25a   : > { %v897_v16 = vsub.f32 0.0, %v881_v58  ;;  %v819_v52 = vmul.f32 %v1826_v9, %v811_v46  ;;  %v836_v41 = vmul.f32 %v1817_v40, %v828_v48 }
 0x25b   : > { %v906_v61 = vsel %vm890_vm13, %v882_v43, %v898_v42 }
 0x25c   : > { %v922_v50 = vadd.f32 1.0, %v906_v61  ;;  %v905_v51 = vsel %vm889_vm14, %v881_v58, %v897_v16  ;;  %v827_v62 = vadd.f32 0.2548296, %v819_v52  ;;  %v876_v1 = vmul.f32 %v1281_v27, %v836_v41 }
 0x25d   : > { %v921_v11 = vadd.f32 1.0, %v905_v51 }
 0x25e   : > { %v930_v12 = vmul.f32 %v922_v50, %v914_v35  ;;  %v835_v49 = vmul.f32 %v1826_v9, %v827_v62  ;;  %v884_v44 = vsub.f32 1.0, %v876_v1 }
 0x25f   : > { %v929_v38 = vmul.f32 %v921_v11, %v913_v34 }
 0x260   : > { %938 = vst [vmem:[%s1843_s9 + $0x28] sm:$0xff] %v930_v12  ;;  %v875_v55 = vmul.f32 %v1283_v15, %v835_v49  ;;  %v900_v3 = vsub.f32 0.0, %v884_v44 }
 0x261   : > { %937 = vst [vmem:[%s1843_s9 + $0x20] sm:$0xff] %v929_v38 }
 0x262   : > { %v883_v2 = vsub.f32 1.0, %v875_v55  ;;  %v908_v40 = vsel %vm892_vm15, %v884_v44, %v900_v3 }
 0x263   : > { %v924_v7 = vadd.f32 1.0, %v908_v40 }
 0x264   : > { %v899_v53 = vsub.f32 0.0, %v883_v2 }
 0x265   : > { %v932_v9 = vmul.f32 %v924_v7, %v916_v5 }
 0x266   : > { %v907_v21 = vsel %vm891_vm0, %v883_v2, %v899_v53 }
 0x267   : > { %v923_v23 = vadd.f32 1.0, %v907_v21  ;;  %940 = vst [vmem:[%s1843_s9 + $0x38] sm:$0xff] %v932_v9 }
 0x269   : > { %v931_v4 = vmul.f32 %v923_v23, %v915_v47 }
 0x26b   : > { %939 = vst [vmem:[%s1843_s9 + $0x30] sm:$0xff] %v931_v4 }
 0x26c   : > { %1297 = shalt.err (!%p1294_p3)
}
 0x26d   : > { %s1298_s28 = scalar_lea.hbm %s1877_s14, 1024  ;;  %s1302_s5 = scalar_lea.hbm %s1929_s4, 2048 }
 0x26e   : > { %p1299_p4 = scmp.ne.s32.totalorder %s1877_s14, %s1298_s28  ;;  %p1303_p9 = scmp.lt.u32.totalorder %s1877_s14, %s1929_s4 }
 0x26f   : > { %p1304_p10 = scmp.lt.u32.totalorder %s1302_s5, %s1298_s28  ;;  %p1306_p12 = scmp.lt.u32.totalorder %s1298_s28, %s1877_s14 }
 0x270   : > { %p1300_p7 = pnand %p1299_p4, %p1416_p5 }
 0x271   : > { %p1305_p11 = por %p1304_p10, %p1303_p9 }
 0x272   : > { %p1301_p8 = pneg %p1300_p7 }
 0x273   : > { %p1307_p13 = por %p1306_p12, %p1305_p11 }
 0x275   : > { %p1308_p0 = pnand %p1307_p13, %p1301_p8 }
 0x277   : > { %1311 = shalt.err (!%p1308_p0)
}
 0x278   : > { %s1351_s8 = smov 128   ;;  %s1352_s9 = smov 8  }
 0x279   : > { %1177 = dma.vmem_to_hbm [thread:$0]  (%p1416_p5), %s1879_s11, 1024, %s1877_s14, %s1884_s19, %s1351_s8, %s1351_s8, %s1352_s9  }
 0x27a PF: > { %p1183_p1 = scmp.ge.s32.totalorder %s1346_s18, 2  ;;  %s970_s10 = sand.u32 1, %s1334_s15  }
 0x27b   : > { %s971_s12 = scalar_lea.sflag [#allocation3], %s970_s10 }
 0x27c   : > { %p1180_p2 = pnand %p1183_p1, %p1420_p6 }
 0x27e   : > { %1329 = dma.done.wait (!%p1180_p2), %s971_s12, 1024  }
 0x27f   : > { %1331 = vsyncadd (!%p1180_p2), %s971_s12, 4294966272  ;;  %p14_p3 = scmp.ge.s32.totalorder %s1403_s21, 4   ;;  %s1932_s15 = smov %s1338_s16 }
 0x280   : > { %s1933_s16 = smov %s1342_s17  ;;  %s1934_s17 = smov %s1414_s24 }
 0x281   : > { %s1935_s18 = smov %s1403_s21  ;;  %16 = sbr.rel (!%p14_p3) target bundleno = 3 (0x3), region = 71 }
 0x288   :  { %976 = vsyncpa [#allocation3], 1 }
 0x289   :  { %978 = vsyncpa [#allocation3 + $0x1], 1 }

</bundles_post_ra>
